<compile_context>
chip_gen: v5e
topology: v5e:2x2
jax: 0.10.0
libtpu: 0.0.40
codegen_flags: <defaults>
</compile_context>

<pallas_src>
import functools

import jax
import jax.numpy as jnp
from jax import lax
from jax.experimental import pallas as pl
from jax.experimental.pallas import tpu as pltpu


# ------------------------------ helpers ------------------------------------ #
def _round_up(v, mult):
    return -(-v // mult) * mult


# ----------------------------- Pallas kernel ------------------------------- #
def _complex_conv_mm_kernel(x_ref, w_ref, o_ref):
    """Fused complex conv GEMM (bias folded into K).

    w_ref : (co2p, kp)   packed [[wr, -wi, br], [wi, wr, bi]] (zero padded)
    x_ref : (kp, tm)     K-major im2col columns [xr ; xi ; 1 ; 0...] (one tile)
    o_ref : (co2p, tm)   rows [0, C_out) = real part, [C_out, 2*C_out) = imag
    """
    o_ref[...] = jnp.dot(w_ref[...], x_ref[...],
                         preferred_element_type=jnp.float32)


# ------------------------------- wrapper ------------------------------------ #
def complex_conv2d(x, w, b, *, stride=1, padding=0, tm=2048):
    """ComplexConv2d forward.

    x: (N, C, H, W)  real or complex; cast to complex64 (PyTorch `.to(weight.dtype)`)
    w: (C_out, C, KH, KW) complex64
    b: (C_out,) complex64
    returns: (N, C_out, OH, OW) complex64
    """
    x = x.astype(jnp.complex64)
    n, c, h, w_in = x.shape
    c_out, _, kh, kw = w.shape
    k = c * kh * kw
    k2 = 2 * k

    # ---- single K-major im2col pass over channel-stacked [real ; imag] ------
    x_stack = jnp.concatenate(
        [jnp.real(x), jnp.imag(x)], axis=1).astype(jnp.float32)   # (N, 2C, H, W)
    patches = lax.conv_general_dilated_patches(
        x_stack, (kh, kw), (stride, stride),
        [(padding, padding), (padding, padding)],
        dimension_numbers=("NCHW", "OIHW", "NCHW"))               # (N, 2K, OH, OW)
    oh = (h + 2 * padding - kh) // stride + 1
    ow = (w_in + 2 * padding - kw) // stride + 1
    ohow = oh * ow
    cols = patches.reshape(n, k2, ohow)                           # free reshape

    # ---- fold bias: one extra contraction row of ones ------------------------
    cols = jnp.concatenate(
        [cols, jnp.ones((n, 1, ohow), jnp.float32)], axis=1)      # (N, 2K+1, M)

    # ---- packed weight LHS: [[wr, -wi, br], [wi, wr, bi]] --------------------
    wr = jnp.real(w).reshape(c_out, k).astype(jnp.float32)
    wi = jnp.imag(w).reshape(c_out, k).astype(jnp.float32)
    br = jnp.real(b).astype(jnp.float32)[:, None]
    bi = jnp.imag(b).astype(jnp.float32)[:, None]
    w_packed = jnp.concatenate(
        [jnp.concatenate([wr, -wi, br], axis=1),
         jnp.concatenate([wi, wr, bi], axis=1)], axis=0)          # (2*C_out, 2K+1)

    # ---- TPU-friendly padding & tiling ---------------------------------------
    kp = _round_up(k2 + 1, 8)               # contraction dim (sublanes of RHS)
    co2p = _round_up(2 * c_out, 8)          # output sublane dim (f32 tiling)
    tm_eff = min(_round_up(tm, 128), _round_up(ohow, 128))   # lane-dense tile
    mp = _round_up(ohow, tm_eff)

    cols_p = jnp.pad(cols, ((0, 0), (0, kp - (k2 + 1)), (0, mp - ohow)))
    w_p = jnp.pad(w_packed, ((0, co2p - 2 * c_out), (0, kp - (k2 + 1))))

    grid = (n, mp // tm_eff)
    out = pl.pallas_call(
        _complex_conv_mm_kernel,
        out_shape=jax.ShapeDtypeStruct((n, co2p, mp), jnp.float32),
        grid_spec=pltpu.PrefetchScalarGridSpec(
            num_scalar_prefetch=0,
            grid=grid,
            in_specs=[
                # K-major column tile for this (batch, M-tile); batch squeezed.
                pl.BlockSpec((None, kp, tm_eff), lambda bidx, i: (bidx, 0, i)),
                # Grid-invariant packed weight (fetched once, ~5 KiB).
                pl.BlockSpec((co2p, kp), lambda bidx, i: (0, 0)),
            ],
            out_specs=pl.BlockSpec((None, co2p, tm_eff),
                                   lambda bidx, i: (bidx, 0, i)),
        ),
        compiler_params=pltpu.CompilerParams(
            dimension_semantics=("parallel", "parallel")),
    )(cols_p, w_p)

    # Row-split real/imag, trim lane padding (no-op when mp == OH*OW),
    # reshape straight to NCHW (no transpose needed).
    out_r = out[:, :c_out, :ohow].reshape(n, c_out, oh, ow)
    out_i = out[:, c_out:2 * c_out, :ohow].reshape(n, c_out, oh, ow)
    return lax.complex(out_r, out_i).astype(jnp.complex64)


# ------------------------------ reference ----------------------------------- #
def _ref_complex_conv2d(x, w, b, *, stride, padding):
    x = x.astype(jnp.complex64)
    dn = ("NCHW", "OIHW", "NCHW")
    conv = functools.partial(
        lax.conv_general_dilated,
        window_strides=(stride, stride),
        padding=[(padding, padding), (padding, padding)],
        dimension_numbers=dn)
    xr, xi = jnp.real(x), jnp.imag(x)
    wr, wi = jnp.real(w), jnp.imag(w)
    out_r = conv(xr, wr) - conv(xi, wi)
    out_i = conv(xr, wi) + conv(xi, wr)
    out = out_r + 1j * out_i
    out = out + b[None, :, None, None]
    return out.astype(jnp.complex64)


# --------------------------------- main -------------------------------------- #
if __name__ == "__main__":
    key = jax.random.PRNGKey(0)
    k_xr, k_xi, k_wr, k_wi, k_br, k_bi = jax.random.split(key, 6)

    # module config (small): dim=4, dim_out=8, kernel=3, stride=1, padding=1
    N, C, H, W = 2, 4, 16, 16
    C_OUT, KH, KW = 8, 3, 3
    STRIDE, PADDING = 1, 1

    # deterministic synthetic parameters (view_as_real storage recombined)
    w = (jax.random.normal(k_wr, (C_OUT, C, KH, KW), jnp.float32) * 0.1
         + 1j * jax.random.normal(k_wi, (C_OUT, C, KH, KW), jnp.float32) * 0.1
         ).astype(jnp.complex64)
    b = (jax.random.normal(k_br, (C_OUT,), jnp.float32) * 0.1
         + 1j * jax.random.normal(k_bi, (C_OUT,), jnp.float32) * 0.1
         ).astype(jnp.complex64)

    # complex input (e.g. STFT output), NCHW
    x = (jax.random.normal(k_xr, (N, C, H, W), jnp.float32)
         + 1j * jax.random.normal(k_xi, (N, C, H, W), jnp.float32)
         ).astype(jnp.complex64)

    out = complex_conv2d(x, w, b, stride=STRIDE, padding=PADDING)
    out = jax.block_until_ready(out)

    ref = _ref_complex_conv2d(x, w, b, stride=STRIDE, padding=PADDING)
    assert out.shape == (N, C_OUT, H, W) and out.dtype == jnp.complex64
    assert jnp.allclose(out, ref, atol=1e-4, rtol=1e-4)

    print("KERNEL_OK")
</pallas_src>

<mosaic_0001>
module attributes {stable_mosaic.version = 11 : i64} {
  func.func @_complex_conv_mm_kernel(%arg0: i32, %arg1: i32, %arg2: memref<1x80x256xf32, #tpu.memory_space<vmem>>, %arg3: memref<16x80xf32, #tpu.memory_space<vmem>>, %arg4: memref<1x16x256xf32, #tpu.memory_space<vmem>>) attributes {dimension_semantics = [#tpu.dimension_semantics<parallel>, #tpu.dimension_semantics<parallel>], iteration_bounds = array<i64: 2, 1>, scalar_prefetch = 0 : i64, scratch_operands = 0 : i64, tpu.core_type = #tpu.core_type<tc>, window_params = [{transform_indices = @transform_0, window_bounds = array<i64: 1, 80, 256>}, {pipeline_mode = #tpu.pipeline_mode<synchronous>, transform_indices = @transform_1, window_bounds = array<i64: 16, 80>}, {transform_indices = @transform_2, window_bounds = array<i64: 1, 16, 256>}]} {
    %c0 = arith.constant 0 : index
    %c0_0 = arith.constant 0 : index
    %0 = vector.load %arg3[%c0, %c0_0] : memref<16x80xf32, #tpu.memory_space<vmem>>, vector<16x80xf32>
    %c0_1 = arith.constant 0 : index
    %c0_2 = arith.constant 0 : index
    %c0_3 = arith.constant 0 : index
    %1 = vector.load %arg2[%c0_1, %c0_2, %c0_3] : memref<1x80x256xf32, #tpu.memory_space<vmem>>, vector<1x80x256xf32>
    %2 = vector.shape_cast %1 : vector<1x80x256xf32> to vector<80x256xf32>
    %cst = arith.constant dense<0.000000e+00> : vector<16x256xf32>
    %3 = tpu.matmul %0, %2, %cst {dimension_numbers = #tpu.dot_dimension_numbers<[1], [0], [0], [1], [0, 0, 1, 1], [], []>} : vector<16x80xf32>, vector<80x256xf32>, vector<16x256xf32> -> vector<16x256xf32>
    %c0_4 = arith.constant 0 : index
    %c0_5 = arith.constant 0 : index
    %c0_6 = arith.constant 0 : index
    %4 = vector.load %arg4[%c0_4, %c0_5, %c0_6] : memref<1x16x256xf32, #tpu.memory_space<vmem>>, vector<1x16x256xf32>
    %5 = vector.shape_cast %4 : vector<1x16x256xf32> to vector<16x256xf32>
    %6 = vector.shape_cast %3 : vector<16x256xf32> to vector<1x16x256xf32>
    tpu.vector_store %arg4[%c0_4, %c0_5, %c0_6], %6 {strides = array<i32>} : memref<1x16x256xf32, #tpu.memory_space<vmem>>, vector<1x16x256xf32>,
    return
  }
  func.func @transform_0(%arg0: i32, %arg1: i32) -> (i32, i32, i32) {
    %c0_i32 = arith.constant 0 : i32
    %c0_i32_0 = arith.constant 0 : i32
    return %arg0, %c0_i32, %arg1 : i32, i32, i32
  }
  func.func @transform_1(%arg0: i32, %arg1: i32) -> (i32, i32) {
    %c0_i32 = arith.constant 0 : i32
    %c0_i32_0 = arith.constant 0 : i32
    %c0_i32_1 = arith.constant 0 : i32
    return %c0_i32, %c0_i32_0 : i32, i32
  }
  func.func @transform_2(%arg0: i32, %arg1: i32) -> (i32, i32, i32) {
    %c0_i32 = arith.constant 0 : i32
    %c0_i32_0 = arith.constant 0 : i32
    return %arg0, %c0_i32, %arg1 : i32, i32, i32
  }
}

</mosaic_0001>

<bundles_post_ra>
// kernel: tpu_custom_call.1
= control target key start
LH: loop header
LB: loop body
LE: loop exit
PB: predicated region body
PF: predicated region fallthrough
CT: control target
= control target key end

     0   :  { %7 = vsyncpa [#allocation3], 0  ;;  %s852_s0 = inlined_call_operand.hbm [shape: f32[2,80,256], index: 0, kind: input, shape index: {}]   ;;  %s853_s1 = inlined_call_operand.hbm [shape: f32[16,80], index: 1, kind: input, shape index: {}]   ;;  %s854_s2 = inlined_call_operand.hbm [shape: f32[2,16,256], index: 2, kind: output, shape index: {}]  }
   0x1   :  { %9 = vsyncpa [#allocation3 + $0x1], 0 }
   0x2   :  { %10 = vsyncpa [#allocation6], 0 }
   0x3   :  { %11 = vsyncpa [#allocation4], 0 }
   0x4   :  { %13 = vsyncpa [#allocation4 + $0x1], 0  ;;  %s686_s9 = smov 0   ;;  %s688_s10 = smov 0  }
   0x5   :  { %s690_s11 = smov 0   ;;  %s692_s12 = smov 0  }
   0x6   :  { %s694_s13 = smov 0   ;;  %s696_s14 = smov 0  }
   0x7 LB: > { %s395_s15 = sadd.s32 4294967295, %s662_s14   ;;  %s396_s16 = sadd.s32 4294967294, %s662_s14   ;;  %s662_s14 = sphi %s696_s14, %s19_s14   ;;  %s658_s13 = sphi %s694_s13, %s865_s13   ;;  %s654_s12 = sphi %s692_s12, %s864_s12   ;;  %s650_s11 = sphi %s690_s11, %s863_s11   ;;  %s646_s10 = sphi %s688_s10, %s862_s10   ;;  %s642_s9 = sphi %s686_s9, %s861_s9  }
   0x8   : > { %p53_p0 = scmp.ne.s32.totalorder %s646_s10, %s642_s9  ;;  %p720_p1 = scmp.eq.s32.totalorder %s395_s15, 0 }
   0x9   : > { %p724_p2 = scmp.eq.s32.totalorder %s395_s15, 1  ;;  %p106_p3 = scmp.eq.s32.totalorder %s396_s16, 1 }
   0xa   : > { %p730_p4 = por %p720_p1, %p53_p0  ;;  %p397_p5 = scmp.ge.s32.totalorder %s662_s14, 1 }
   0xb   : > { %p735_p6 = por %p106_p3, %p53_p0  ;;  %p113_p7 = scmp.lt.s32.totalorder %s662_s14, 3 }
   0xc   : > { %s124_s23 = sshll.u32 %s853_s1, 4  ;;  %s664_s25 = smov [#allocation5]   ;;  %s125_s23 = int_to_ptr.hbm [resolvable:$true] %s124_s23 }
   0xd   : > { %p743_p8 = pnand %p397_p5, %p113_p7  ;;  %s126_s26 = sshll.u32 %s664_s25, 4  ;;  %s127_s26 = int_to_ptr.vmem [resolvable:$true] %s126_s26 }
   0xe   : > { %p399_p11 = scmp.ge.s32.totalorder %s662_s14, 2  ;;  %s665_s27 = smov 128  }
   0xf   : > { %p445_p9 = pneg %p743_p8  ;;  %s666_s28 = smov 8  }
  0x10   : > { %s31_s29 = sadd.s32 1, %s658_s13  ;;  %s40_s30 = sadd.s32 1, %s650_s11 }
  0x11   : > { %p446_p10 = pnand %p445_p9, %p720_p1  ;;  %p33_p12 = scmp.ge.s32.totalorder %s31_s29, 2 }
  0x12   : > { %p47_p13 = scmp.ne.s32.totalorder %s650_s11, %s646_s10  ;;  %p48_p0 = scmp.eq.s32.totalorder %s662_s14, 0 }
  0x13   : > { %448 = dma.hbm_to_vmem [thread:$0]  (!%p446_p10), %s125_s23, 256, %s127_s26, [#allocation6], %s665_s27, %s665_s27, %s666_s28  }
  0x14   : > { %s867_s29 = smov (%p33_p12, %s31_s29), 0  ;;  %p49_p3 = por %p48_p0, %p47_p13 }
  0x15   : > { %p761_p5 = por %p724_p2, %p47_p13  ;;  %s35_s4 = ssub.s32 %s658_s13, %s867_s29 }
  0x16   : > { %p458_p7 = scmp.lt.s32.totalorder %s662_s14, 2  ;;  %p38_p9 = scmp.eq.s32.totalorder %s35_s4, 0 }
  0x17   : > { %s140_s5 = sand.u32 1, %s650_s11   ;;  %s435_s8 = smul.u32 160, %s658_s13 }
  0x18   : > { %s434_s6 = smul.u32 160, %s140_s5  ;;  %p450_p10 = pnand %p458_p7, %p49_p3 }
  0x19   : > { %s770_s7 = scalar_select %p38_p9, %s650_s11, %s40_s30  }
  0x1a   : > { %s144_s15 = scalar_lea.vmem [#allocation2], %s434_s6  ;;  %s151_s23 = scalar_lea.hbm %s852_s0, %s435_s8 }
  0x1b   : > { %s154_s16 = sshll.u32 %s144_s15, 4  ;;  %s152_s18 = sshll.u32 %s151_s23, 4  ;;  %s155_s16 = int_to_ptr.vmem [resolvable:$true] %s154_s16  ;;  %s153_s18 = int_to_ptr.hbm [resolvable:$true] %s152_s18 }
  0x1c   : > { %s141_s25 = scalar_lea.sflag [#allocation3], %s140_s5  ;;  %s667_s26 = smov 256  }
  0x1d   : > { %s668_s27 = smov 16   ;;  %166 = sbr.rel (%p743_p8) target bundleno = 195 (0xc3), region = 28 }
  0x1e   : > { %452 = dma.hbm_to_vmem [thread:$0]  (!%p450_p10), %s153_s18, 2560, %s155_s16, %s141_s25, %s667_s26, %s667_s26, %s668_s27  }
  0x1f   : > { %s779_s28 = sand.u32 (!%p743_p8), 1, %s646_s10  }
  0x20   : > { %s436_s30 = smul.u32 (!%p743_p8), 160, %s779_s28  ;;  %s169_s4 = scalar_lea.sflag (!%p743_p8), [#allocation3], %s779_s28 }
  0x22   : > { %s783_s6 = scalar_lea.vmem [#allocation2], %s436_s30 }
  0x23   : > { %629 = dma.done.wait (%p730_p4), %s169_s4, 2560  }
  0x24   : > { %631 = vsyncadd (%p730_p4), %s169_s4, 4294964736 }
  0x25   : > { %633 = dma.done.wait (%p720_p1), [#allocation6], 256  }
  0x26   : > { %635 = vsyncadd (%p720_p1), [#allocation6], 4294967040  ;;  %v221_v0 = vld [vmem:[%s783_s6 + $0x90] sm:$0xff]  ;;  %v222_v1 = vld [vmem:[%s783_s6 + $0x98] sm:$0xff]  ;;  %vm223_vm0 = vcmask 654336   ;;  %s403_s17 = sshll.u32 %s779_s28, 5 }
  0x27   : > { %v219_v2 = vld [vmem:[%s783_s6 + $0x80] sm:$0xff]  ;;  %414 = vmatpush.msra.mxu2 %v221_v0  ;;  %424 = vmatpush.msra.mxu3 %v222_v1  ;;  %v220_v3 = vld [vmem:[%s783_s6 + $0x88] sm:$0xff]  ;;  %v217_v4 = vld [vmem:[%s783_s6 + $0x70] sm:$0xff]  ;;  %s413_s19 = sshll.u32 %s654_s12, 5  ;;  %s198_s15 = scalar_lea.vmem [#allocation7], %s403_s17 }
  0x28   : > { %v218_v5 = vld [vmem:[%s783_s6 + $0x78] sm:$0xff]  ;;  %236 = vmatpush.msra.mxu0 %v221_v0  ;;  %259 = vmatpush.msra.mxu1 %v222_v1  ;;  %v215_v6 = vld [vmem:[%s783_s6 + $0x60] sm:$0xff]  ;;  %v216_v7 = vld [vmem:[%s783_s6 + $0x68] sm:$0xff]  ;;  %s294_s8 = scalar_lea.hbm %s854_s2, %s413_s19  ;;  %s295_s16 = sshll.u32 %s198_s15, 4  ;;  %s296_s16 = int_to_ptr.vmem [resolvable:$true] %s295_s16 }
  0x29   : > { %415 = vmatpush.msra.mxu2 %v219_v2  ;;  %425 = vmatpush.msra.mxu3 %v220_v3  ;;  %v213_v8 = vld [vmem:[%s783_s6 + $0x50] sm:$0xff]  ;;  %v214_v9 = vld [vmem:[%s783_s6 + $0x58] sm:$0xff]  ;;  %v211_v10 = vld [vmem:[%s783_s6 + $0x40] sm:$0xff]  ;;  %s297_s21 = sshll.u32 %s294_s8, 4  ;;  %s281_s22 = scalar_lea.sflag [#allocation4], %s779_s28  ;;  %s298_s21 = int_to_ptr.hbm [resolvable:$true] %s297_s21 }
  0x2a   : > { %237 = vmatpush.msra.mxu0 %v219_v2  ;;  %260 = vmatpush.msra.mxu1 %v220_v3  ;;  %v212_v11 = vld [vmem:[%s783_s6 + $0x48] sm:$0xff]  ;;  %v209_v12 = vld [vmem:[%s783_s6 + $0x30] sm:$0xff]  ;;  %v210_v13 = vld [vmem:[%s783_s6 + $0x38] sm:$0xff]  ;;  %s590_s12 = sshra.s32 %s298_s21, 4  ;;  %s596_s26 = scalar_lea.hbm %s854_s2, 64  ;;  %s591_s12 = int_to_ptr.hbm [resolvable:$true] %s590_s12 }
  0x2b   : > { %416 = vmatpush.msra.mxu2 %v217_v4  ;;  %426 = vmatpush.msra.mxu3 %v218_v5  ;;  %v207_v14 = vld [vmem:[%s783_s6 + $0x20] sm:$0xff]  ;;  %v208_v15 = vld [vmem:[%s783_s6 + $0x28] sm:$0xff]  ;;  %v205_v16 = vld [vmem:[%s783_s6 + $0x10] sm:$0xff]  ;;  %s592_s23 = scalar_lea.hbm %s591_s12, 32  ;;  %p597_p8 = scmp.lt.s32.totalorder %s591_s12, %s854_s2 }
  0x2c   : > { %238 = vmatpush.msra.mxu0 %v217_v4  ;;  %261 = vmatpush.msra.mxu1 %v218_v5  ;;  %v206_v17 = vld [vmem:[%s783_s6 + $0x18] sm:$0xff]  ;;  %v203_v18 = vld [vmem:[%s783_s6] sm:$0xff]  ;;  %v204_v19 = vld [vmem:[%s783_s6 + $0x8] sm:$0xff]  ;;  %p593_p1 = scmp.ne.s32.totalorder %s591_s12, %s592_s23  ;;  %p598_p12 = scmp.lt.s32.totalorder %s596_s26, %s592_s23 }
  0x2d   : > { %417 = vmatpush.msra.mxu2 %v215_v6  ;;  %427 = vmatpush.msra.mxu3 %v216_v7  ;;  %v202_v20 = vld [vmem:[#allocation5 + $0x8] sm:$0xff]  ;;  %v201_v21 = vld [vmem:[#allocation5] sm:$0xff] }
  0x2e   : > { %239 = vmatpush.msra.mxu0 %v215_v6  ;;  %262 = vmatpush.msra.mxu1 %v216_v7  ;;  %p594_p2 = pnand %p593_p1, %p761_p5  ;;  %p599_p13 = por %p598_p12, %p597_p8 }
  0x2f   : > { %418 = vmatpush.msra.mxu2 %v213_v8  ;;  %428 = vmatpush.msra.mxu3 %v214_v9 }
  0x30   : > { %240 = vmatpush.msra.mxu0 %v213_v8  ;;  %263 = vmatpush.msra.mxu1 %v214_v9  ;;  %p595_p4 = pneg %p594_p2 }
  0x31   : > { %419 = vmatpush.msra.mxu2 %v211_v10  ;;  %429 = vmatpush.msra.mxu3 %v212_v11 }
  0x32   : > { %241 = vmatpush.msra.mxu0 %v211_v10  ;;  %264 = vmatpush.msra.mxu1 %v212_v11  ;;  %p600_p0 = pnand %p599_p13, %p595_p4 }
  0x33   : > { %420 = vmatpush.msra.mxu2 %v209_v12  ;;  %430 = vmatpush.msra.mxu3 %v210_v13 }
  0x34   : > { %242 = vmatpush.msra.mxu0 %v209_v12  ;;  %265 = vmatpush.msra.mxu1 %v210_v13 }
  0x35   : > { %421 = vmatpush.msra.mxu2 %v207_v14  ;;  %431 = vmatpush.msra.mxu3 %v208_v15 }
  0x36   : > { %243 = vmatpush.msra.mxu0 %v207_v14  ;;  %266 = vmatpush.msra.mxu1 %v208_v15 }
  0x37   : > { %422 = vmatpush.msra.mxu2 %v205_v16  ;;  %432 = vmatpush.msra.mxu3 %v206_v17 }
  0x38   : > { %244 = vmatpush.msra.mxu0 %v205_v16  ;;  %267 = vmatpush.msra.mxu1 %v206_v17 }
  0x39   : > { %423 = vmatpush.msra.mxu2 %v203_v18  ;;  %433 = vmatpush.msra.mxu3 %v204_v19 }
  0x3a   : > { %405 = vmatmul.msk.f32.vlgmr.msra.gmra.mxu2 %vm223_vm0, %v202_v20  ;;  %407 = vmatmul.msk.f32.vlgmr.msra.gmra.mxu3 %vm223_vm0, %v202_v20 }
  0x3b   : > { %245 = vmatpush.msra.mxu0 %v203_v18  ;;  %268 = vmatpush.msra.mxu1 %v204_v19 }
  0x3c   : > { %404 = vmatmul.msk.f32.vlgmr.msra.gmra.mxu0 %vm223_vm0, %v201_v21  ;;  %406 = vmatmul.msk.f32.vlgmr.msra.gmra.mxu1 %vm223_vm0, %v201_v21 }
  0xb9   : > { %v247_v22 = vpop.f32.mrf.mxu0  ;;  %v270_v23 = vpop.f32.mrf.mxu1 }
  0xba   : > { %276 = vst [vmem:[%s198_s15] sm:$0xff] %v247_v22 }
  0xbb   : > { %277 = vst [vmem:[%s198_s15 + $0x8] sm:$0xff] %v270_v23 }
  0xbd   : > { %v250_v24 = vpop.f32.mrf.mxu2  ;;  %v273_v25 = vpop.f32.mrf.mxu3 }
  0xbe   : > { %278 = vst [vmem:[%s198_s15 + $0x10] sm:$0xff] %v250_v24 }
  0xbf   : > { %279 = vst [vmem:[%s198_s15 + $0x18] sm:$0xff] %v273_v25 }
  0xc0   : > { %603 = shalt.err (!%p600_p0)
}
  0xc1   : > { %s669_s28 = smov 256   ;;  %s670_s4 = smov 16  }
  0xc2   : > { %443 = dma.vmem_to_hbm [thread:$0]  (%p761_p5), %s296_s16, 512, %s298_s21, %s281_s22, %s669_s28, %s669_s28, %s670_s4  }
  0xc3 PF: > { %s312_s6 = sand.u32 1, %s642_s9   ;;  %p454_p3 = pnand %p399_p11, %p735_p6 }
  0xc4   : > { %s313_s17 = scalar_lea.sflag [#allocation4], %s312_s6 }
  0xc5   : > { %p455_p7 = pneg %p454_p3 }
  0xc7   : > { %637 = dma.done.wait (%p455_p7), %s313_s17, 512  }
  0xc8   : > { %639 = vsyncadd (%p455_p7), %s313_s17, 4294966784  ;;  %s19_s14 = sadd.s32 1, %s662_s14   ;;  %s861_s9 = smov %s646_s10 }
  0xc9   : > { %p16_p9 = scmp.ge.s32.totalorder %s19_s14, 4   ;;  %s862_s10 = smov %s650_s11 }
  0xca   : > { %s863_s11 = smov %s770_s7  ;;  %s864_s12 = smov %s658_s13 }
  0xcb   : > { %s865_s13 = smov %s867_s29  ;;  %18 = sbr.rel (!%p16_p9) target bundleno = 7 (0x7), region = 77 }
  0xd0   :  { %319 = vsyncpa [#allocation3], 1 }
  0xd1   :  { %321 = vsyncpa [#allocation3 + $0x1], 1 }
  0xd2   :  { %322 = vsyncpa [#allocation6], 1 }
  0xd3   :  { %323 = vsyncpa [#allocation4], 1 }
  0xd4   :  { %325 = vsyncpa [#allocation4 + $0x1], 1 }

</bundles_post_ra>
